<compile_context>
chip_gen: v6e
topology: v6e:2x2x1
jax: 0.10.0
libtpu: 0.0.40
codegen_flags: <defaults>
</compile_context>

<pallas_src>
import functools
import math

import jax
import jax.numpy as jnp
from jax import lax
from jax.experimental import pallas as pl
from jax.experimental.pallas import tpu as pltpu

LEAKY_SLOPE = 0.01     # nn.LeakyReLU default negative_slope
LANE = 128             # TPU lane width
SUBLANE = 8            # TPU sublane width


def _round_up(n, m):
    return ((n + m - 1) // m) * m


def _leaky_relu(x):
    return jnp.where(x >= 0, x, LEAKY_SLOPE * x)


def net_kernel(x_ref, w1_ref, b1_ref, w_ref, b_ref, wo_ref, bo_ref, y_ref,
               *, layers):
    # fc1 + leaky_relu  (dropout = identity at inference)
    x = x_ref[...].astype(jnp.bfloat16)
    h = jnp.dot(x, w1_ref[...], preferred_element_type=jnp.float32)
    h = _leaky_relu(h + b1_ref[...])

    # shared fc applied `layers` times
    def body(_, h):
        z = jnp.dot(h.astype(jnp.bfloat16), w_ref[...],
                    preferred_element_type=jnp.float32)
        return _leaky_relu(z + b_ref[...])

    h = lax.fori_loop(0, layers, body, h, unroll=True)

    # Output projection. wo is stored as (8, H) rows with only row 0 nonzero;
    # contracting on the hidden (lane) dim yields a lane-dense (8, TILE_B)
    # result instead of a masked last-dim-1 column. Rows 1..7 are exactly zero,
    # so the sublane row-sum recovers row 0 -> (1, TILE_B) unmasked store.
    a8 = lax.dot_general(wo_ref[...], h.astype(jnp.bfloat16),
                         dimension_numbers=(((1,), (1,)), ((), ())),
                         preferred_element_type=jnp.float32)
    a = jnp.sum(a8, axis=0, keepdims=True) + bo_ref[...]
    y_ref[...] = jax.nn.sigmoid(a)


def net_forward(x, params, *, layers, tile_b=256):
    """x: [B, D_in] float32. params: padded / pre-transposed weights (init_params)."""
    B, d_in = x.shape
    d_pad, hid = params["w1"].shape
    assert d_in <= d_pad

    b_pad = _round_up(B, tile_b)
    num_tiles = b_pad // tile_b

    # Zero-pad batch rows and feature columns (zero features x zero weight rows
    # contribute nothing to the real outputs).
    x_p = jnp.zeros((b_pad, d_pad), x.dtype).at[:B, :d_in].set(x)

    kernel = functools.partial(net_kernel, layers=layers)
    resident = lambda arr: pl.BlockSpec(arr.shape, lambda i: (0, 0))

    y = pl.pallas_call(
        kernel,
        grid=(num_tiles,),
        in_specs=[
            # TODO(synk): on v5e, tile_b=128 plus pipeline_mode=pl.Buffered(3)
            # on this spec hides exposed DMA better than a wider tile.
            pl.BlockSpec((tile_b, d_pad), lambda i: (i, 0)),   # x: pipelined
            resident(params["w1"]), resident(params["b1"]),
            resident(params["w"]),  resident(params["b"]),
            resident(params["wo"]), resident(params["bo"]),
        ],
        out_specs=pl.BlockSpec((1, tile_b), lambda i: (0, i)),  # lane-dense row
        out_shape=jax.ShapeDtypeStruct((1, b_pad), jnp.float32),
        compiler_params=pltpu.CompilerParams(
            dimension_semantics=("parallel",),      # megacore sharding on v7x
            vmem_limit_bytes=32 * 1024 * 1024,      # safe on v5e/v6e/v7x
        ),
    )(x_p, params["w1"], params["b1"], params["w"], params["b"],
      params["wo"], params["bo"])

    return y.reshape(b_pad, 1)[:B]


def init_params(key, d_in, nodes):
    """Returns (kernel_params, ref_params).

    kernel_params: lane-padded, pre-transposed ([in, out]) bf16 weights plus f32
    biases; padded columns/rows are exactly zero so leaky_relu keeps the padded
    hidden lanes at 0 and results match the unpadded network.
    ref_params: raw unpadded f32 tensors for the pure-JAX reference.
    """
    d_pad = _round_up(d_in, LANE)
    hid = _round_up(nodes, LANE)
    ks = jax.random.split(key, 6)

    def lin(kw, kb, fan_in, fan_out):
        bound = 1.0 / math.sqrt(fan_in)
        w = jax.random.uniform(kw, (fan_in, fan_out), jnp.float32, -bound, bound)
        b = jax.random.uniform(kb, (fan_out,), jnp.float32, -bound, bound)
        return w, b

    w1, b1 = lin(ks[0], ks[1], d_in, nodes)    # fc1
    w, b = lin(ks[2], ks[3], nodes, nodes)     # fc (shared across the loop)
    wo, bo = lin(ks[4], ks[5], nodes, 1)       # out

    W1 = jnp.zeros((d_pad, hid), jnp.float32).at[:d_in, :nodes].set(w1)
    B1 = jnp.zeros((1, hid), jnp.float32).at[0, :nodes].set(b1)
    W = jnp.zeros((hid, hid), jnp.float32).at[:nodes, :nodes].set(w)
    Bh = jnp.zeros((1, hid), jnp.float32).at[0, :nodes].set(b)
    # out weights as rows, sublane-padded to 8 so every MXU operand is aligned.
    Wo = jnp.zeros((SUBLANE, hid), jnp.float32).at[0, :nodes].set(wo[:, 0])
    Bo = bo.reshape(1, 1)

    kparams = {
        "w1": W1.astype(jnp.bfloat16), "b1": B1,
        "w": W.astype(jnp.bfloat16), "b": Bh,
        "wo": Wo.astype(jnp.bfloat16), "bo": Bo,
    }
    rparams = {"w1": w1, "b1": b1, "w": w, "b": b, "wo": wo, "bo": bo}
    return kparams, rparams


if __name__ == "__main__":
    B, D_IN, NODES, LAYERS = 8, 16, 32, 2

    key = jax.random.PRNGKey(0)
    kx, kp = jax.random.split(key)
    x = jax.random.normal(kx, (B, D_IN), jnp.float32)
    kparams, rparams = init_params(kp, D_IN, NODES)

    y = net_forward(x, kparams, layers=LAYERS)
    jax.block_until_ready(y)

    # Pure-JAX f32 reference of the PyTorch forward (dropout = identity in eval).
    h = _leaky_relu(x @ rparams["w1"] + rparams["b1"])
    for _ in range(LAYERS):
        h = _leaky_relu(h @ rparams["w"] + rparams["b"])
    y_ref = jax.nn.sigmoid(h @ rparams["wo"] + rparams["bo"])

    assert y.shape == (B, 1)
    # bf16 matmul operands with f32 accumulation vs pure-f32 reference.
    assert jnp.allclose(y, y_ref, atol=2e-2, rtol=0), (y, y_ref)

    print("KERNEL_OK")
</pallas_src>

<mosaic_0001>
module attributes {stable_mosaic.version = 11 : i64} {
  func.func @net_kernel(%arg0: i32, %arg1: memref<256x128xf32, #tpu.memory_space<vmem>>, %arg2: memref<128x128xbf16, #tpu.memory_space<vmem>>, %arg3: memref<1x128xf32, #tpu.memory_space<vmem>>, %arg4: memref<128x128xbf16, #tpu.memory_space<vmem>>, %arg5: memref<1x128xf32, #tpu.memory_space<vmem>>, %arg6: memref<8x128xbf16, #tpu.memory_space<vmem>>, %arg7: memref<1x1xf32, #tpu.memory_space<vmem>>, %arg8: memref<1x256xf32, #tpu.memory_space<vmem>>) attributes {dimension_semantics = [#tpu.dimension_semantics<parallel>], iteration_bounds = array<i64: 1>, scalar_prefetch = 0 : i64, scratch_operands = 0 : i64, tpu.core_type = #tpu.core_type<tc>, window_params = [{transform_indices = @transform_0, window_bounds = array<i64: 256, 128>}, {pipeline_mode = #tpu.pipeline_mode<synchronous>, transform_indices = @transform_1, window_bounds = array<i64: 128, 128>}, {pipeline_mode = #tpu.pipeline_mode<synchronous>, transform_indices = @transform_2, window_bounds = array<i64: 1, 128>}, {pipeline_mode = #tpu.pipeline_mode<synchronous>, transform_indices = @transform_3, window_bounds = array<i64: 128, 128>}, {pipeline_mode = #tpu.pipeline_mode<synchronous>, transform_indices = @transform_4, window_bounds = array<i64: 1, 128>}, {pipeline_mode = #tpu.pipeline_mode<synchronous>, transform_indices = @transform_5, window_bounds = array<i64: 8, 128>}, {pipeline_mode = #tpu.pipeline_mode<synchronous>, transform_indices = @transform_6, window_bounds = array<i64: 1, 1>}, {transform_indices = @transform_7, window_bounds = array<i64: 1, 256>}]} {
    %c0 = arith.constant 0 : index
    %c0_0 = arith.constant 0 : index
    %0 = vector.load %arg1[%c0, %c0_0] : memref<256x128xf32, #tpu.memory_space<vmem>>, vector<256x128xf32>
    %1 = arith.truncf %0 : vector<256x128xf32> to vector<256x128xbf16>
    %c0_1 = arith.constant 0 : index
    %c0_2 = arith.constant 0 : index
    %2 = vector.load %arg2[%c0_1, %c0_2] : memref<128x128xbf16, #tpu.memory_space<vmem>>, vector<128x128xbf16>
    %cst = arith.constant dense<0.000000e+00> : vector<256x128xf32>
    %3 = tpu.matmul %1, %2, %cst {dimension_numbers = #tpu.dot_dimension_numbers<[1], [0], [0], [1], [0, 0, 1, 1], [], []>} : vector<256x128xbf16>, vector<128x128xbf16>, vector<256x128xf32> -> vector<256x128xf32>
    %c0_3 = arith.constant 0 : index
    %c0_4 = arith.constant 0 : index
    %4 = vector.load %arg3[%c0_3, %c0_4] : memref<1x128xf32, #tpu.memory_space<vmem>>, vector<1x128xf32>
    %5 = vector.broadcast %4 : vector<1x128xf32> to vector<256x128xf32>
    %6 = arith.addf %3, %5 : vector<256x128xf32>
    %cst_5 = arith.constant 0.000000e+00 : f32
    %7 = vector.broadcast %cst_5 : f32 to vector<256x128xf32>
    %8 = arith.cmpf oge, %6, %7 : vector<256x128xf32>
    %cst_6 = arith.constant 0.00999999977 : f32
    %9 = vector.broadcast %cst_6 : f32 to vector<256x128xf32>
    %10 = arith.mulf %9, %6 : vector<256x128xf32>
    %11 = arith.select %8, %6, %10 : vector<256x128xi1>, vector<256x128xf32>
    %c0_i32 = arith.constant 0 : i32
    %12 = arith.truncf %11 : vector<256x128xf32> to vector<256x128xbf16>
    %c0_7 = arith.constant 0 : index
    %c0_8 = arith.constant 0 : index
    %13 = vector.load %arg4[%c0_7, %c0_8] : memref<128x128xbf16, #tpu.memory_space<vmem>>, vector<128x128xbf16>
    %cst_9 = arith.constant dense<0.000000e+00> : vector<256x128xf32>
    %14 = tpu.matmul %12, %13, %cst_9 {dimension_numbers = #tpu.dot_dimension_numbers<[1], [0], [0], [1], [0, 0, 1, 1], [], []>} : vector<256x128xbf16>, vector<128x128xbf16>, vector<256x128xf32> -> vector<256x128xf32>
    %c0_10 = arith.constant 0 : index
    %c0_11 = arith.constant 0 : index
    %15 = vector.load %arg5[%c0_10, %c0_11] : memref<1x128xf32, #tpu.memory_space<vmem>>, vector<1x128xf32>
    %16 = vector.broadcast %15 : vector<1x128xf32> to vector<256x128xf32>
    %17 = arith.addf %14, %16 : vector<256x128xf32>
    %cst_12 = arith.constant 0.000000e+00 : f32
    %18 = vector.broadcast %cst_12 : f32 to vector<256x128xf32>
    %19 = arith.cmpf oge, %17, %18 : vector<256x128xf32>
    %cst_13 = arith.constant 0.00999999977 : f32
    %20 = vector.broadcast %cst_13 : f32 to vector<256x128xf32>
    %21 = arith.mulf %20, %17 : vector<256x128xf32>
    %22 = arith.select %19, %17, %21 : vector<256x128xi1>, vector<256x128xf32>
    %c1_i32 = arith.constant 1 : i32
    %23 = arith.truncf %22 : vector<256x128xf32> to vector<256x128xbf16>
    %c0_14 = arith.constant 0 : index
    %c0_15 = arith.constant 0 : index
    %24 = vector.load %arg4[%c0_14, %c0_15] : memref<128x128xbf16, #tpu.memory_space<vmem>>, vector<128x128xbf16>
    %cst_16 = arith.constant dense<0.000000e+00> : vector<256x128xf32>
    %25 = tpu.matmul %23, %24, %cst_16 {dimension_numbers = #tpu.dot_dimension_numbers<[1], [0], [0], [1], [0, 0, 1, 1], [], []>} : vector<256x128xbf16>, vector<128x128xbf16>, vector<256x128xf32> -> vector<256x128xf32>
    %c0_17 = arith.constant 0 : index
    %c0_18 = arith.constant 0 : index
    %26 = vector.load %arg5[%c0_17, %c0_18] : memref<1x128xf32, #tpu.memory_space<vmem>>, vector<1x128xf32>
    %27 = vector.broadcast %26 : vector<1x128xf32> to vector<256x128xf32>
    %28 = arith.addf %25, %27 : vector<256x128xf32>
    %cst_19 = arith.constant 0.000000e+00 : f32
    %29 = vector.broadcast %cst_19 : f32 to vector<256x128xf32>
    %30 = arith.cmpf oge, %28, %29 : vector<256x128xf32>
    %cst_20 = arith.constant 0.00999999977 : f32
    %31 = vector.broadcast %cst_20 : f32 to vector<256x128xf32>
    %32 = arith.mulf %31, %28 : vector<256x128xf32>
    %33 = arith.select %30, %28, %32 : vector<256x128xi1>, vector<256x128xf32>
    %c0_21 = arith.constant 0 : index
    %c0_22 = arith.constant 0 : index
    %34 = vector.load %arg6[%c0_21, %c0_22] : memref<8x128xbf16, #tpu.memory_space<vmem>>, vector<8x128xbf16>
    %35 = arith.truncf %33 : vector<256x128xf32> to vector<256x128xbf16>
    %cst_23 = arith.constant dense<0.000000e+00> : vector<8x256xf32>
    %36 = tpu.matmul %34, %35, %cst_23 {dimension_numbers = #tpu.dot_dimension_numbers<[1], [1], [0], [0], [0, 0, 1, 0], [], []>} : vector<8x128xbf16>, vector<256x128xbf16>, vector<8x256xf32> -> vector<8x256xf32>
    %cst_24 = arith.constant dense<0.000000e+00> : vector<256xf32>
    %37 = vector.multi_reduction <add>, %36, %cst_24 [0] : vector<8x256xf32> to vector<256xf32>
    %38 = vector.shape_cast %37 : vector<256xf32> to vector<1x256xf32>
    %c0_25 = arith.constant 0 : index
    %c0_26 = arith.constant 0 : index
    %39 = vector.load %arg7[%c0_25, %c0_26] : memref<1x1xf32, #tpu.memory_space<vmem>>, vector<1x1xf32>
    %40 = vector.broadcast %39 : vector<1x1xf32> to vector<1x256xf32>
    %41 = arith.addf %38, %40 : vector<1x256xf32>
    %42 = arith.negf %41 : vector<1x256xf32>
    %43 = math.exp %42 : vector<1x256xf32>
    %cst_27 = arith.constant 1.000000e+00 : f32
    %44 = vector.broadcast %cst_27 : f32 to vector<1x256xf32>
    %45 = arith.addf %44, %43 : vector<1x256xf32>
    %46 = arith.divf %44, %45 : vector<1x256xf32>
    %c0_28 = arith.constant 0 : index
    %c0_29 = arith.constant 0 : index
    %47 = vector.load %arg8[%c0_28, %c0_29] : memref<1x256xf32, #tpu.memory_space<vmem>>, vector<1x256xf32>
    tpu.vector_store %arg8[%c0_28, %c0_29], %46 {strides = array<i32>} : memref<1x256xf32, #tpu.memory_space<vmem>>, vector<1x256xf32>,
    return
  }
  func.func @transform_0(%arg0: i32) -> (i32, i32) {
    %c0_i32 = arith.constant 0 : i32
    %c0_i32_0 = arith.constant 0 : i32
    return %arg0, %c0_i32 : i32, i32
  }
  func.func @transform_1(%arg0: i32) -> (i32, i32) {
    %c0_i32 = arith.constant 0 : i32
    %c0_i32_0 = arith.constant 0 : i32
    %c0_i32_1 = arith.constant 0 : i32
    return %c0_i32, %c0_i32_0 : i32, i32
  }
  func.func @transform_2(%arg0: i32) -> (i32, i32) {
    %c0_i32 = arith.constant 0 : i32
    %c0_i32_0 = arith.constant 0 : i32
    %c0_i32_1 = arith.constant 0 : i32
    return %c0_i32, %c0_i32_0 : i32, i32
  }
  func.func @transform_3(%arg0: i32) -> (i32, i32) {
    %c0_i32 = arith.constant 0 : i32
    %c0_i32_0 = arith.constant 0 : i32
    %c0_i32_1 = arith.constant 0 : i32
    return %c0_i32, %c0_i32_0 : i32, i32
  }
  func.func @transform_4(%arg0: i32) -> (i32, i32) {
    %c0_i32 = arith.constant 0 : i32
    %c0_i32_0 = arith.constant 0 : i32
    %c0_i32_1 = arith.constant 0 : i32
    return %c0_i32, %c0_i32_0 : i32, i32
  }
  func.func @transform_5(%arg0: i32) -> (i32, i32) {
    %c0_i32 = arith.constant 0 : i32
    %c0_i32_0 = arith.constant 0 : i32
    %c0_i32_1 = arith.constant 0 : i32
    return %c0_i32, %c0_i32_0 : i32, i32
  }
  func.func @transform_6(%arg0: i32) -> (i32, i32) {
    %c0_i32 = arith.constant 0 : i32
    %c0_i32_0 = arith.constant 0 : i32
    %c0_i32_1 = arith.constant 0 : i32
    return %c0_i32, %c0_i32_0 : i32, i32
  }
  func.func @transform_7(%arg0: i32) -> (i32, i32) {
    %c0_i32 = arith.constant 0 : i32
    %c0_i32_0 = arith.constant 0 : i32
    return %c0_i32, %arg0 : i32, i32
  }
}

</mosaic_0001>

<bundles_post_ra>
// kernel: tpu_custom_call.1
= control target key start
LH: loop header
LB: loop body
LE: loop exit
PB: predicated region body
PF: predicated region fallthrough
CT: control target
= control target key end

     0   :  { %s1879_s0 = inlined_call_operand.hbm [shape: f32[256,128], index: 0, kind: input, shape index: {}]   ;;  %s1880_s1 = inlined_call_operand.hbm [shape: bf16[128,128], index: 1, kind: input, shape index: {}]   ;;  %s1881_s2 = inlined_call_operand.vmem [shape: f32[1,128], index: 2, kind: input, shape index: {}]   ;;  %s1882_s3 = inlined_call_operand.hbm [shape: bf16[128,128], index: 3, kind: input, shape index: {}]   ;;  %s1883_s4 = inlined_call_operand.vmem [shape: f32[1,128], index: 4, kind: input, shape index: {}]   ;;  %s1884_s5 = inlined_call_operand.vmem [shape: bf16[8,128], index: 5, kind: input, shape index: {}]   ;;  %s1885_s6 = inlined_call_operand.<no memory space> [shape: f32[1,1], index: 6, kind: input, shape index: {}]   ;;  %s1886_s7 = inlined_call_operand.hbm [shape: f32[1,256], index: 7, kind: output, shape index: {}]  }
   0x1   :  { %v12_v0 = vstv %s1885_s6 }
   0x2   :  { %13 = vst [vmem:[#allocation2] sm:$0x1] %v12_v0 }
   0x3   :  { %14 = vsyncpa [#allocation4], 0 }
   0x4   :  { %15 = vsyncpa [#allocation7], 0 }
   0x5   :  { %16 = vsyncpa [#allocation5], 0  ;;  %s1588_s26 = smov [#allocation6]  }
   0x6   :  { %s34_s27 = sshll.u32 %s1588_s26, 4  ;;  %s35_s27 = int_to_ptr.vmem [resolvable:$true] %s34_s27 }
   0x7   :  { %s1510_s28 = scalar_lea.vmem %s35_s27, 1024  ;;  %p1515_p1 = scmp.lt.s32.totalorder %s35_s27, %s35_s27 }
   0x8   :  { %p1511_p0 = scmp.ne.s32.totalorder %s35_s27, %s1510_s28  ;;  %p1516_p2 = scmp.lt.s32.totalorder %s1510_s28, %s1510_s28 }
   0xa   :  { %p1517_p3 = por %p1516_p2, %p1515_p1 }
   0xc   :  { %p1518_p4 = pnand %p1517_p3, %p1511_p0 }
   0xe   :  { %1521 = shalt.err (!%p1518_p4)
}
   0xf   :  { %s1589_s29 = smov 64   ;;  %s1590_s30 = smov 4  }
  0x10   :  { %40 = dma.hbm_to_vmem [thread:$0]  %s1880_s1, 1024, %s35_s27, [#allocation7], %s1589_s29, %s1589_s29, %s1590_s30  }
  0x11   :  { %s1591_s6 = smov [#allocation3]  }
  0x12   :  { %s22_s10 = sshll.u32 %s1591_s6, 4  ;;  %s23_s10 = int_to_ptr.vmem [resolvable:$true] %s22_s10 }
  0x13   :  { %s1530_s11 = scalar_lea.vmem %s23_s10, 4096  ;;  %p1535_p6 = scmp.lt.s32.totalorder %s23_s10, %s23_s10 }
  0x14   :  { %p1531_p5 = scmp.ne.s32.totalorder %s23_s10, %s1530_s11  ;;  %p1536_p7 = scmp.lt.s32.totalorder %s1530_s11, %s1530_s11 }
  0x16   :  { %p1537_p8 = por %p1536_p7, %p1535_p6 }
  0x18   :  { %p1538_p9 = pnand %p1537_p8, %p1531_p5 }
  0x1a   :  { %1541 = shalt.err (!%p1538_p9)
}
  0x1b   :  { %s1592_s12 = smov 128   ;;  %s1593_s13 = smov 8  }
  0x1c   :  { %28 = dma.hbm_to_vmem [thread:$0]  %s1879_s0, 4096, %s23_s10, [#allocation4], %s1592_s12, %s1592_s12, %s1593_s13  }
  0x1d   :  { %s1594_s16 = smov [#allocation8]  }
  0x1e   :  { %s48_s17 = sshll.u32 %s1594_s16, 4  ;;  %s49_s17 = int_to_ptr.vmem [resolvable:$true] %s48_s17 }
  0x1f   :  { %s1550_s1 = scalar_lea.vmem %s49_s17, 1024  ;;  %p1555_p11 = scmp.lt.s32.totalorder %s49_s17, %s49_s17 }
  0x20   :  { %p1551_p10 = scmp.ne.s32.totalorder %s49_s17, %s1550_s1  ;;  %p1556_p12 = scmp.lt.s32.totalorder %s1550_s1, %s1550_s1 }
  0x22   :  { %p1557_p13 = por %p1556_p12, %p1555_p11 }
  0x24   :  { %p1558_p0 = pnand %p1557_p13, %p1551_p10 }
  0x26   :  { %1561 = shalt.err (!%p1558_p0)
}
  0x27   :  { %54 = dma.hbm_to_vmem [thread:$0]  %s1882_s3, 1024, %s49_s17, [#allocation7], %s1589_s29, %s1589_s29, %s1590_s30  }
  0x28   :  { %1582 = dma.done.wait [#allocation4], 4096  }
  0x29   :  { %1583 = vsyncadd [#allocation4], 4294963200 }
  0x2a   :  { %1584 = dma.done.wait [#allocation7], 2048  }
  0x2b   :  { %1585 = vsyncadd [#allocation7], 4294965248  ;;  %v1478_v1 = vld [vmem:[#allocation6 + $0x38] sm:$0xff]   ;;  %v1479_v2 = vld [vmem:[#allocation6 + $0x30] sm:$0xff]  }
  0x2c   :  { %1307 = vmatprep.subr.bf16.mxu0 %v1478_v1  ;;  %1451 = vmatprep.subr.bf16.mxu1 %v1478_v1  ;;  %v1480_v3 = vld [vmem:[#allocation6 + $0x28] sm:$0xff]   ;;  %v1481_v4 = vld [vmem:[#allocation6 + $0x20] sm:$0xff]   ;;  %v1482_v8 = vld [vmem:[#allocation6 + $0x18] sm:$0xff]  }
  0x2d   :  { %1308 = vmatpush3.bf16.msra.mxu0 %v1478_v1  ;;  %1459 = vmatpush3.bf16.msra.mxu1 %v1478_v1  ;;  %v71_v5 = vld [vmem:[#allocation3] sm:$0xff]  ;;  %v72_v6 = vld [vmem:[#allocation3 + $0x8] sm:$0xff]  ;;  %v1483_v12 = vld [vmem:[#allocation6 + $0x10] sm:$0xff]  }
  0x2e   :  { %1309 = vmatprep.subr.bf16.mxu0 %v1479_v2  ;;  %1452 = vmatprep.subr.bf16.mxu1 %v1479_v2  ;;  %v103_v7 = vpack.c.bf16 %v72_v6, %v71_v5  ;;  %v87_v9 = vld [vmem:[#allocation3 + $0x80] sm:$0xff]  ;;  %v88_v10 = vld [vmem:[#allocation3 + $0x88] sm:$0xff]  ;;  %v73_v15 = vld [vmem:[#allocation3 + $0x10] sm:$0xff] }
  0x2f   :  { %v111_v11 = vpack.c.bf16 %v88_v10, %v87_v9  ;;  %v1484_v13 = vld [vmem:[#allocation6 + $0x8] sm:$0xff]   ;;  %v1485_v14 = vld [vmem:[#allocation6] sm:$0xff]   ;;  %v74_v16 = vld [vmem:[#allocation3 + $0x18] sm:$0xff] }
  0x30   :  { %1323 = vmatprep.mubr.bf16.mxu0 %v103_v7  ;;  %v75_v17 = vld [vmem:[#allocation3 + $0x20] sm:$0xff]  ;;  %v76_v18 = vld [vmem:[#allocation3 + $0x28] sm:$0xff]  ;;  %v89_v19 = vld [vmem:[#allocation3 + $0x90] sm:$0xff]  ;;  %v104_v24 = vpack.c.bf16 %v74_v16, %v73_v15 }
  0x31   :  { %1310 = vmatpush3.bf16.msra.mxu0 %v1479_v2  ;;  %1460 = vmatpush3.bf16.msra.mxu1 %v1479_v2  ;;  %v90_v20 = vld [vmem:[#allocation3 + $0x98] sm:$0xff]  ;;  %v91_v21 = vld [vmem:[#allocation3 + $0xa0] sm:$0xff]  ;;  %v92_v22 = vld [vmem:[#allocation3 + $0xa8] sm:$0xff]  ;;  %v105_v25 = vpack.c.bf16 %v76_v18, %v75_v17 }
  0x32   :  { %1311 = vmatprep.subr.bf16.mxu0 %v1480_v3  ;;  %1453 = vmatprep.subr.bf16.mxu1 %v1480_v3  ;;  %v1486_v23 = vld [vmem:[#allocation8 + $0x38] sm:$0xff]   ;;  %v112_v26 = vpack.c.bf16 %v90_v20, %v89_v19  ;;  %v113_v27 = vpack.c.bf16 %v92_v22, %v91_v21  ;;  %v1487_v28 = vld [vmem:[#allocation8 + $0x30] sm:$0xff]   ;;  %v79_v31 = vld [vmem:[#allocation3 + $0x40] sm:$0xff] }
  0x33   :  { %1339 = vmatprep.mubr.bf16.mxu1 %v111_v11  ;;  %v77_v29 = vld [vmem:[#allocation3 + $0x30] sm:$0xff]  ;;  %v78_v30 = vld [vmem:[#allocation3 + $0x38] sm:$0xff]  ;;  %v80_v32 = vld [vmem:[#allocation3 + $0x48] sm:$0xff] }
  0x34   :  { %v93_v33 = vld [vmem:[#allocation3 + $0xb0] sm:$0xff]  ;;  %v94_v34 = vld [vmem:[#allocation3 + $0xb8] sm:$0xff]  ;;  %v95_v35 = vld [vmem:[#allocation3 + $0xc0] sm:$0xff]  ;;  %v106_v38 = vpack.c.bf16 %v78_v30, %v77_v29  ;;  %v107_v39 = vpack.c.bf16 %v80_v32, %v79_v31 }
  0x35   :  { %1312 = vmatpush3.bf16.msra.mxu0 %v1480_v3  ;;  %1461 = vmatpush3.bf16.msra.mxu1 %v1480_v3  ;;  %v96_v36 = vld [vmem:[#allocation3 + $0xc8] sm:$0xff]  ;;  %v114_v40 = vpack.c.bf16 %v94_v34, %v93_v33  ;;  %v1489_v42 = vld [vmem:[#allocation8 + $0x20] sm:$0xff]   ;;  %v81_v43 = vld [vmem:[#allocation3 + $0x50] sm:$0xff] }
  0x36   :  { %1313 = vmatprep.subr.bf16.mxu0 %v1481_v4  ;;  %1454 = vmatprep.subr.bf16.mxu1 %v1481_v4  ;;  %v1488_v37 = vld [vmem:[#allocation8 + $0x28] sm:$0xff]   ;;  %v115_v41 = vpack.c.bf16 %v96_v36, %v95_v35  ;;  %v82_v44 = vld [vmem:[#allocation3 + $0x58] sm:$0xff]  ;;  %v83_v45 = vld [vmem:[#allocation3 + $0x60] sm:$0xff] }
  0x37   :  { %v84_v46 = vld [vmem:[#allocation3 + $0x68] sm:$0xff]  ;;  %v97_v47 = vld [vmem:[#allocation3 + $0xd0] sm:$0xff]  ;;  %v98_v48 = vld [vmem:[#allocation3 + $0xd8] sm:$0xff]  ;;  %v108_v52 = vpack.c.bf16 %v82_v44, %v81_v43 }
  0x38   :  { %v99_v49 = vld [vmem:[#allocation3 + $0xe0] sm:$0xff]  ;;  %v100_v50 = vld [vmem:[#allocation3 + $0xe8] sm:$0xff]  ;;  %v1490_v51 = vld [vmem:[#allocation8 + $0x18] sm:$0xff]   ;;  %v109_v53 = vpack.c.bf16 %v84_v46, %v83_v45  ;;  %v116_v54 = vpack.c.bf16 %v98_v48, %v97_v47 }
  0x39   :  { %1314 = vmatpush3.bf16.msra.mxu0 %v1481_v4  ;;  %1462 = vmatpush3.bf16.msra.mxu1 %v1481_v4  ;;  %v117_v55 = vpack.c.bf16 %v100_v50, %v99_v49  ;;  %v85_v56 = vld [vmem:[#allocation3 + $0x70] sm:$0xff]  ;;  %v86_v57 = vld [vmem:[#allocation3 + $0x78] sm:$0xff]  ;;  %v1492_v63 = vld [vmem:[#allocation8 + $0x8] sm:$0xff]  }
  0x3a   :  { %1315 = vmatprep.subr.bf16.mxu0 %v1482_v8  ;;  %1455 = vmatprep.subr.bf16.mxu1 %v1482_v8  ;;  %v101_v58 = vld [vmem:[#allocation3 + $0xf0] sm:$0xff]  ;;  %v102_v59 = vld [vmem:[#allocation3 + $0xf8] sm:$0xff]  ;;  %v110_v60 = vpack.c.bf16 %v86_v57, %v85_v56  ;;  %v1493_v0 = vld [vmem:[#allocation8] sm:$0xff]  }
  0x3b   :  { %v118_v61 = vpack.c.bf16 %v102_v59, %v101_v58  ;;  %v1491_v62 = vld [vmem:[#allocation8 + $0x10] sm:$0xff]   ;;  %v1653_v2 = vld [vmem:[%s1881_s2] ss:$0 sm:$0xff] }
  0x3d   :  { %1316 = vmatpush3.bf16.msra.mxu0 %v1482_v8  ;;  %1463 = vmatpush3.bf16.msra.mxu1 %v1482_v8 }
  0x3e   :  { %1317 = vmatprep.subr.bf16.mxu0 %v1483_v12  ;;  %1456 = vmatprep.subr.bf16.mxu1 %v1483_v12 }
  0x41   :  { %1318 = vmatpush3.bf16.msra.mxu0 %v1483_v12  ;;  %1464 = vmatpush3.bf16.msra.mxu1 %v1483_v12 }
  0x42   :  { %1319 = vmatprep.subr.bf16.mxu0 %v1484_v13  ;;  %1457 = vmatprep.subr.bf16.mxu1 %v1484_v13 }
  0x45   :  { %1320 = vmatpush3.bf16.msra.mxu0 %v1484_v13  ;;  %1465 = vmatpush3.bf16.msra.mxu1 %v1484_v13 }
  0x46   :  { %1321 = vmatprep.subr.bf16.mxu0 %v1485_v14  ;;  %1458 = vmatprep.subr.bf16.mxu1 %v1485_v14 }
  0x49   :  { %1322 = vmatpush3.bf16.msra.mxu0 %v1485_v14  ;;  %1466 = vmatpush3.bf16.msra.mxu1 %v1485_v14 }
  0x4a   :  { %1403 = vmatprep.subr.bf16.mxu0 %v1486_v23  ;;  %1355 = vmatprep.subr.bf16.mxu1 %v1486_v23 }
  0x4c   :  { %1324 = vmatmul.mubr.bf16.vlgmr.msra.gmra.mxu0 %v104_v24  ;;  %1340 = vmatmul.mubr.bf16.vlgmr.msra.gmra.mxu1 %v112_v26 }
  0x4d   :  { %1327 = vmatprep.mubr.bf16.mxu0 %v105_v25  ;;  %1343 = vmatprep.mubr.bf16.mxu1 %v113_v27 }
  0x4e   :  { %1356 = vmatpush3.bf16.msra.mxu1 %v1486_v23  ;;  %1404 = vmatpush3.bf16.msra.mxu0 %v1486_v23 }
  0x4f   :  { %1357 = vmatprep.subr.bf16.mxu1 %v1487_v28  ;;  %1405 = vmatprep.subr.bf16.mxu0 %v1487_v28 }
  0x52   :  { %1358 = vmatpush3.bf16.msra.mxu1 %v1487_v28  ;;  %1406 = vmatpush3.bf16.msra.mxu0 %v1487_v28 }
  0x53   :  { %1359 = vmatprep.subr.bf16.mxu1 %v1488_v37  ;;  %1407 = vmatprep.subr.bf16.mxu0 %v1488_v37 }
  0x54   :  { %1328 = vmatmul.mubr.bf16.gmra.mxu0 %v106_v38  ;;  %1344 = vmatmul.mubr.bf16.gmra.mxu1 %v114_v40 }
  0x55   :  { %1331 = vmatprep.mubr.bf16.mxu0 %v107_v39  ;;  %1347 = vmatprep.mubr.bf16.mxu1 %v115_v41 }
  0x56   :  { %1360 = vmatpush3.bf16.msra.mxu1 %v1488_v37  ;;  %1408 = vmatpush3.bf16.msra.mxu0 %v1488_v37 }
  0x57   :  { %1361 = vmatprep.subr.bf16.mxu1 %v1489_v42  ;;  %1409 = vmatprep.subr.bf16.mxu0 %v1489_v42 }
  0x5a   :  { %1362 = vmatpush3.bf16.msra.mxu1 %v1489_v42  ;;  %1410 = vmatpush3.bf16.msra.mxu0 %v1489_v42 }
  0x5b   :  { %1363 = vmatprep.subr.bf16.mxu1 %v1490_v51  ;;  %1411 = vmatprep.subr.bf16.mxu0 %v1490_v51 }
  0x5c   :  { %1332 = vmatmul.mubr.bf16.gmra.mxu0 %v108_v52  ;;  %1348 = vmatmul.mubr.bf16.gmra.mxu1 %v116_v54 }
  0x5d   :  { %1335 = vmatprep.mubr.bf16.mxu0 %v109_v53  ;;  %1351 = vmatprep.mubr.bf16.mxu1 %v117_v55 }
  0x5e   :  { %1364 = vmatpush3.bf16.msra.mxu1 %v1490_v51  ;;  %1412 = vmatpush3.bf16.msra.mxu0 %v1490_v51 }
  0x5f   :  { %1365 = vmatprep.subr.bf16.mxu1 %v1491_v62  ;;  %1413 = vmatprep.subr.bf16.mxu0 %v1491_v62 }
  0x62   :  { %1366 = vmatpush3.bf16.msra.mxu1 %v1491_v62  ;;  %1414 = vmatpush3.bf16.msra.mxu0 %v1491_v62 }
  0x63   :  { %1367 = vmatprep.subr.bf16.mxu1 %v1492_v63  ;;  %1415 = vmatprep.subr.bf16.mxu0 %v1492_v63 }
  0x64   :  { %1336 = vmatmul.mubr.bf16.gmra.mxu0 %v110_v60  ;;  %1352 = vmatmul.mubr.bf16.gmra.mxu1 %v118_v61 }
  0x66   :  { %1368 = vmatpush3.bf16.msra.mxu1 %v1492_v63  ;;  %1416 = vmatpush3.bf16.msra.mxu0 %v1492_v63 }
  0x67   :  { %1369 = vmatprep.subr.bf16.mxu1 %v1493_v0  ;;  %1417 = vmatprep.subr.bf16.mxu0 %v1493_v0 }
  0x6a   :  { %1370 = vmatpush3.bf16.msra.mxu1 %v1493_v0  ;;  %1418 = vmatpush3.bf16.msra.mxu0 %v1493_v0 }
 0x10c   :  { %v1325_v1 = vpop.f32.mrf.mxu0  ;;  %v1655_v3 = vpop.f32.mrf.mxu1 }
 0x10d   :  { %v233_v7 = vadd.f32 %v1325_v1, %v1653_v2 }
 0x10e   :  { %v224_v4 = vpop.f32.mrf.mxu0  ;;  %v1658_v6 = vpop.f32.mrf.mxu1 }
 0x10f   :  { %v225_v5 = vadd.f32 %v1653_v2, %v224_v4  ;;  %v385_v16 = vmul.f32 0.01, %v233_v7  ;;  %vm353_vm2 = vcmp.ge.f32.partialorder %v233_v7, 0.0  ;;  %v289_v62 = vadd.f32 %v1653_v2, %v1658_v6 }
 0x110   :  { %v1326_v8 = vpop.f32.mrf.mxu0  ;;  %v1662_v10 = vpop.f32.mrf.mxu1 }
 0x111   :  { %v236_v9 = vadd.f32 %v1326_v8, %v1653_v2  ;;  %v383_v12 = vmul.f32 0.01, %v225_v5  ;;  %vm351_vm1 = vcmp.ge.f32.partialorder %v225_v5, 0.0  ;;  %v417_v26 = vsel %vm353_vm2, %v233_v7, %v385_v16 }
 0x112   :  { %v227_v11 = vpop.f32.mrf.mxu0  ;;  %v1665_v15 = vpop.f32.mrf.mxu1  ;;  %vm367_vm12 = vcmp.ge.f32.partialorder %v289_v62, 0.0  ;;  %v399_v6 = vmul.f32 0.01, %v289_v62 }
 0x113   :  { %vm354_vm0 = vcmp.ge.f32.partialorder %v236_v9, 0.0  ;;  %v386_v13 = vmul.f32 0.01, %v236_v9  ;;  %v228_v14 = vadd.f32 %v1653_v2, %v227_v11  ;;  %v415_v23 = vsel %vm351_vm1, %v225_v5, %v383_v12 }
 0x114   :  { %v1329_v17 = vpop.f32.mrf.mxu0  ;;  %v1667_v19 = vpop.f32.mrf.mxu1  ;;  %v292_v63 = vadd.f32 %v1653_v2, %v1665_v15 }
 0x115   :  { %vm352_vm3 = vcmp.ge.f32.partialorder %v228_v14, 0.0  ;;  %v384_v18 = vmul.f32 0.01, %v228_v14  ;;  %v418_v20 = vsel %vm354_vm0, %v236_v9, %v386_v13  ;;  %v249_v27 = vadd.f32 %v1329_v17, %v1653_v2 }
 0x116   :  { %v240_v21 = vpop.f32.mrf.mxu0  ;;  %v1670_v25 = vpop.f32.mrf.mxu1  ;;  %v448_v30 = vpack.c.bf16 %v418_v20, %v417_v26  ;;  %v400_v17 = vmul.f32 0.01, %v292_v63  ;;  %vm368_vm15 = vcmp.ge.f32.partialorder %v292_v63, 0.0  ;;  %v300_v26 = vadd.f32 %v1662_v10, %v1653_v2 }
 0x117   :  { %v241_v22 = vadd.f32 %v1653_v2, %v240_v21  ;;  %v416_v24 = vsel %vm352_vm3, %v228_v14, %v384_v18  ;;  %v389_v37 = vmul.f32 0.01, %v249_v27  ;;  %vm357_vm6 = vcmp.ge.f32.partialorder %v249_v27, 0.0 }
 0x118   :  { %v1330_v28 = vpop.f32.mrf.mxu0  ;;  %v447_v29 = vpack.c.bf16 %v416_v24, %v415_v23  ;;  %v1674_v32 = vpop.f32.mrf.mxu1  ;;  %v297_v23 = vadd.f32 %v1655_v3, %v1653_v2  ;;  %vm370_vm3 = vcmp.ge.f32.partialorder %v300_v26, 0.0 }
 0x119   :  { %v252_v31 = vadd.f32 %v1330_v28, %v1653_v2  ;;  %v387_v34 = vmul.f32 0.01, %v241_v22  ;;  %vm355_vm5 = vcmp.ge.f32.partialorder %v241_v22, 0.0  ;;  %v421_v49 = vsel %vm357_vm6, %v249_v27, %v389_v37 }
 0x11a   :  { %v243_v33 = vpop.f32.mrf.mxu0  ;;  %1371 = vmatprep.mubr.bf16.mxu1 %v447_v29  ;;  %v1677_v39 = vpop.f32.mrf.mxu1  ;;  %v305_v27 = vadd.f32 %v1653_v2, %v1670_v25  ;;  %v431_v29 = vsel %vm367_vm12, %v289_v62, %v399_v6  ;;  %vm369_vm2 = vcmp.ge.f32.partialorder %v297_v23, 0.0 }
 0x11b   :  { %vm358_vm4 = vcmp.ge.f32.partialorder %v252_v31, 0.0  ;;  %v390_v35 = vmul.f32 0.01, %v252_v31  ;;  %v244_v36 = vadd.f32 %v1653_v2, %v243_v33  ;;  %1372 = vmatmul.mubr.bf16.vlgmr.msra.gmra.mxu1 %v448_v30  ;;  %v419_v44 = vsel %vm355_vm5, %v241_v22, %v387_v34 }
 0x11c   :  { %v1333_v38 = vpop.f32.mrf.mxu0  ;;  %v1681_v50 = vpop.f32.mrf.mxu1  ;;  %v308_v30 = vadd.f32 %v1653_v2, %v1677_v39  ;;  %v432_v34 = vsel %vm368_vm15, %v292_v63, %v400_v17  ;;  %v403_v25 = vmul.f32 0.01, %v305_v27 }
 0x11d   :  { %vm356_vm7 = vcmp.ge.f32.partialorder %v244_v36, 0.0  ;;  %v388_v40 = vmul.f32 0.01, %v244_v36  ;;  %v422_v42 = vsel %vm358_vm4, %v252_v31, %v390_v35  ;;  %v265_v46 = vadd.f32 %v1333_v38, %v1653_v2 }
 0x11e   :  { %v256_v41 = vpop.f32.mrf.mxu0  ;;  %v450_v52 = vpack.c.bf16 %v422_v42, %v421_v49  ;;  %v1685_v59 = vpop.f32.mrf.mxu1  ;;  %v401_v38 = vmul.f32 0.01, %v297_v23  ;;  %v455_v10 = vpack.c.bf16 %v432_v34, %v431_v29  ;;  %vm371_vm4 = vcmp.ge.f32.partialorder %v305_v27, 0.0 }
 0x11f   :  { %v257_v43 = vadd.f32 %v1653_v2, %v256_v41  ;;  %v420_v45 = vsel %vm356_vm7, %v244_v36, %v388_v40  ;;  %v393_v57 = vmul.f32 0.01, %v265_v46  ;;  %vm361_vm10 = vcmp.ge.f32.partialorder %v265_v46, 0.0 }
 0x120   :  { %v1334_v47 = vpop.f32.mrf.mxu0  ;;  %v449_v48 = vpack.c.bf16 %v420_v45, %v419_v44  ;;  %v1693_v12 = vpop.f32.mrf.mxu1  ;;  %v402_v40 = vmul.f32 0.01, %v300_v26  ;;  %v404_v41 = vmul.f32 0.01, %v308_v30  ;;  %vm372_vm5 = vcmp.ge.f32.partialorder %v308_v30, 0.0 }
 0x121   :  { %v268_v51 = vadd.f32 %v1334_v47, %v1653_v2  ;;  %v391_v54 = vmul.f32 0.01, %v257_v43  ;;  %vm359_vm9 = vcmp.ge.f32.partialorder %v257_v43, 0.0  ;;  %v425_v11 = vsel %vm361_vm10, %v265_v46, %v393_v57 }
 0x122   :  { %v259_v53 = vpop.f32.mrf.mxu0  ;;  %1375 = vmatprep.mubr.bf16.mxu1 %v449_v48  ;;  %v323_v22 = vpop.f32.mrf.mxu1  ;;  %v313_v42 = vadd.f32 %v1667_v19, %v1653_v2  ;;  %v433_v44 = vsel %vm369_vm2, %v297_v23, %v401_v38  ;;  %v434_v45 = vsel %vm370_vm3, %v300_v26, %v402_v40  ;;  %v321_v46 = vadd.f32 %v1653_v2, %v1685_v59 }
 0x123   :  { %vm362_vm8 = vcmp.ge.f32.partialorder %v268_v51, 0.0  ;;  %v394_v55 = vmul.f32 0.01, %v268_v51  ;;  %v260_v56 = vadd.f32 %v1653_v2, %v259_v53  ;;  %1376 = vmatmul.mubr.bf16.gmra.mxu1 %v450_v52  ;;  %v423_v4 = vsel %vm359_vm9, %v257_v43, %v391_v54 }
 0x124   :  { %v1337_v58 = vpop.f32.mrf.mxu0  ;;  %v1353_v3 = vpop.f32.mrf.mxu1  ;;  %v316_v43 = vadd.f32 %v1674_v32, %v1653_v2  ;;  %v324_v47 = vadd.f32 %v1653_v2, %v323_v22  ;;  %v435_v48 = vsel %vm371_vm4, %v305_v27, %v403_v25  ;;  %v436_v49 = vsel %vm372_vm5, %v308_v30, %v404_v41 }
 0x125   :  { %vm360_vm11 = vcmp.ge.f32.partialorder %v260_v56, 0.0  ;;  %v392_v60 = vmul.f32 0.01, %v260_v56  ;;  %v426_v0 = vsel %vm362_vm8, %v268_v51, %v394_v55  ;;  %v281_v7 = vadd.f32 %v1337_v58, %v1653_v2 }
 0x126   :  { %v272_v61 = vpop.f32.mrf.mxu0  ;;  %v452_v14 = vpack.c.bf16 %v426_v0, %v425_v11  ;;  %v336_v39 = vpop.f32.mrf.mxu1  ;;  %v456_v52 = vpack.c.bf16 %v434_v45, %v433_v44  ;;  %v405_v53 = vmul.f32 0.01, %v313_v42  ;;  %v406_v54 = vmul.f32 0.01, %v316_v43 }
 0x127   :  { %v273_v1 = vadd.f32 %v1653_v2, %v272_v61  ;;  %v424_v5 = vsel %vm360_vm11, %v260_v56, %v392_v60  ;;  %v397_v21 = vmul.f32 0.01, %v281_v7  ;;  %vm365_vm0 = vcmp.ge.f32.partialorder %v281_v7, 0.0 }
 0x128   :  { %v1338_v8 = vpop.f32.mrf.mxu0  ;;  %v451_v9 = vpack.c.bf16 %v424_v5, %v423_v4  ;;  %v1354_v51 = vpop.f32.mrf.mxu1  ;;  %v457_v55 = vpack.c.bf16 %v436_v49, %v435_v48  ;;  %vm373_vm6 = vcmp.ge.f32.partialorder %v313_v42, 0.0  ;;  %vm374_vm7 = vcmp.ge.f32.partialorder %v316_v43, 0.0 }
 0x129   :  { %v284_v13 = vadd.f32 %v1338_v8, %v1653_v2  ;;  %v395_v15 = vmul.f32 0.01, %v273_v1  ;;  %vm363_vm14 = vcmp.ge.f32.partialorder %v273_v1, 0.0  ;;  %v429_v36 = vsel %vm365_vm0, %v281_v7, %v397_v21 }
 0x12a   :  { %v275_v16 = vpop.f32.mrf.mxu0  ;;  %1379 = vmatprep.mubr.bf16.mxu1 %v451_v9  ;;  %v407_v19 = vmul.f32 0.01, %v321_v46  ;;  %v408_v56 = vmul.f32 0.01, %v324_v47  ;;  %vm375_vm8 = vcmp.ge.f32.partialorder %v321_v46, 0.0  ;;  %vm376_vm9 = vcmp.ge.f32.partialorder %v324_v47, 0.0  ;;  %v339_v32 = vpop.f32.mrf.mxu1 }
 0x12b   :  { %vm366_vm13 = vcmp.ge.f32.partialorder %v284_v13, 0.0  ;;  %v398_v18 = vmul.f32 0.01, %v284_v13  ;;  %v276_v20 = vadd.f32 %v1653_v2, %v275_v16  ;;  %1380 = vmatmul.mubr.bf16.gmra.mxu1 %v452_v14  ;;  %v427_v31 = vsel %vm363_vm14, %v273_v1, %v395_v15 }
 0x12c   :  { %v329_v57 = vadd.f32 %v1681_v50, %v1653_v2  ;;  %v332_v58 = vadd.f32 %v1693_v12, %v1653_v2  ;;  %v437_v59 = vsel %vm373_vm6, %v313_v42, %v405_v53  ;;  %v438_v60 = vsel %vm374_vm7, %v316_v43, %v406_v54 }
 0x12d   :  { %vm364_vm1 = vcmp.ge.f32.partialorder %v276_v20, 0.0  ;;  %v396_v24 = vmul.f32 0.01, %v276_v20  ;;  %v430_v28 = vsel %vm366_vm13, %v284_v13, %v398_v18  ;;  %v337_v61 = vadd.f32 %v1653_v2, %v336_v39 }
 0x12e   :  { %v454_v37 = vpack.c.bf16 %v430_v28, %v429_v36  ;;  %v340_v62 = vadd.f32 %v1653_v2, %v339_v32  ;;  %v439_v63 = vsel %vm375_vm8, %v321_v46, %v407_v19  ;;  %v440_v0 = vsel %vm376_vm9, %v324_v47, %v408_v56 }
 0x12f   :  { %v428_v33 = vsel %vm364_vm1, %v276_v20, %v396_v24  ;;  %v458_v1 = vpack.c.bf16 %v438_v60, %v437_v59  ;;  %v409_v4 = vmul.f32 0.01, %v329_v57  ;;  %v410_v5 = vmul.f32 0.01, %v332_v58 }
 0x130   :  { %v453_v35 = vpack.c.bf16 %v428_v33, %v427_v31  ;;  %v459_v7 = vpack.c.bf16 %v440_v0, %v439_v63  ;;  %vm377_vm10 = vcmp.ge.f32.partialorder %v329_v57, 0.0  ;;  %vm378_vm11 = vcmp.ge.f32.partialorder %v332_v58, 0.0 }
 0x131   :  { %v411_v8 = vmul.f32 0.01, %v337_v61  ;;  %v412_v9 = vmul.f32 0.01, %v340_v62  ;;  %vm379_vm12 = vcmp.ge.f32.partialorder %v337_v61, 0.0  ;;  %vm380_vm13 = vcmp.ge.f32.partialorder %v340_v62, 0.0 }
 0x132   :  { %1383 = vmatprep.mubr.bf16.mxu1 %v453_v35  ;;  %v345_v50 = vadd.f32 %v1353_v3, %v1653_v2  ;;  %v348_v11 = vadd.f32 %v1354_v51, %v1653_v2  ;;  %v441_v12 = vsel %vm377_vm10, %v329_v57, %v409_v4  ;;  %v442_v13 = vsel %vm378_vm11, %v332_v58, %v410_v5  ;;  %v1724_v2 = vld [vmem:[%s1883_s4] ss:$0 sm:$0xff] }
 0x133   :  { %1384 = vmatmul.mubr.bf16.gmra.mxu1 %v454_v37  ;;  %v443_v14 = vsel %vm379_vm12, %v337_v61, %v411_v8  ;;  %v444_v6 = vsel %vm380_vm13, %v340_v62, %v412_v9  ;;  %v460_v16 = vpack.c.bf16 %v442_v13, %v441_v12 }
 0x134   :  { %1387 = vmatprep.mubr.bf16.mxu1 %v455_v10  ;;  %v413_v17 = vmul.f32 0.01, %v345_v50  ;;  %v414_v15 = vmul.f32 0.01, %v348_v11  ;;  %v461_v18 = vpack.c.bf16 %v444_v6, %v443_v14  ;;  %vm381_vm14 = vcmp.ge.f32.partialorder %v345_v50, 0.0 }
 0x135   :  { %vm382_vm15 = vcmp.ge.f32.partialorder %v348_v11, 0.0 }
 0x136   :  { %v445_v20 = vsel %vm381_vm14, %v345_v50, %v413_v17  ;;  %v446_v21 = vsel %vm382_vm15, %v348_v11, %v414_v15 }
 0x137   :  { %v462_v22 = vpack.c.bf16 %v446_v21, %v445_v20 }
 0x13b   :  { %1388 = vmatmul.mubr.bf16.gmra.mxu1 %v456_v52 }
 0x13c   :  { %1391 = vmatprep.mubr.bf16.mxu1 %v457_v55 }
 0x143   :  { %1392 = vmatmul.mubr.bf16.gmra.mxu1 %v458_v1 }
 0x144   :  { %1395 = vmatprep.mubr.bf16.mxu1 %v459_v7 }
 0x14b   :  { %1396 = vmatmul.mubr.bf16.gmra.mxu1 %v460_v16 }
 0x14c   :  { %1399 = vmatprep.mubr.bf16.mxu1 %v461_v18 }
 0x153   :  { %1400 = vmatmul.mubr.bf16.gmra.mxu1 %v462_v22 }
 0x1db   :  { %v1373_v23 = vpop.f32.mrf.mxu1 }
 0x1dc   :  { %v577_v27 = vadd.f32 %v1373_v23, %v1724_v2 }
 0x1dd   :  { %v568_v24 = vpop.f32.mrf.mxu1 }
 0x1de   :  { %v569_v26 = vadd.f32 %v1724_v2, %v568_v24  ;;  %v729_v35 = vmul.f32 0.01, %v577_v27  ;;  %vm697_vm2 = vcmp.ge.f32.partialorder %v577_v27, 0.0 }
 0x1df   :  { %v1374_v28 = vpop.f32.mrf.mxu1 }
 0x1e0   :  { %v580_v29 = vadd.f32 %v1374_v28, %v1724_v2  ;;  %v727_v31 = vmul.f32 0.01, %v569_v26  ;;  %vm695_vm1 = vcmp.ge.f32.partialorder %v569_v26, 0.0  ;;  %v761_v41 = vsel %vm697_vm2, %v577_v27, %v729_v35 }
 0x1e1   :  { %v571_v30 = vpop.f32.mrf.mxu1 }
 0x1e2   :  { %vm698_vm0 = vcmp.ge.f32.partialorder %v580_v29, 0.0  ;;  %v730_v33 = vmul.f32 0.01, %v580_v29  ;;  %v572_v34 = vadd.f32 %v1724_v2, %v571_v30  ;;  %v759_v10 = vsel %vm695_vm1, %v569_v26, %v727_v31 }
 0x1e3   :  { %v1377_v36 = vpop.f32.mrf.mxu1 }
 0x1e4   :  { %vm696_vm3 = vcmp.ge.f32.partialorder %v572_v34, 0.0  ;;  %v728_v3 = vmul.f32 0.01, %v572_v34  ;;  %v762_v37 = vsel %vm698_vm0, %v580_v29, %v730_v33  ;;  %v593_v39 = vadd.f32 %v1377_v36, %v1724_v2 }
 0x1e5   :  { %v584_v38 = vpop.f32.mrf.mxu1  ;;  %v792_v44 = vpack.c.bf16 %v762_v37, %v761_v41 }
 0x1e6   :  { %v585_v40 = vadd.f32 %v1724_v2, %v584_v38  ;;  %v760_v25 = vsel %vm696_vm3, %v572_v34, %v728_v3  ;;  %v733_v51 = vmul.f32 0.01, %v593_v39  ;;  %vm701_vm6 = vcmp.ge.f32.partialorder %v593_v39, 0.0 }
 0x1e7   :  { %v1378_v42 = vpop.f32.mrf.mxu1  ;;  %v791_v43 = vpack.c.bf16 %v760_v25, %v759_v10 }
 0x1e8   :  { %v596_v45 = vadd.f32 %v1378_v42, %v1724_v2  ;;  %v731_v47 = vmul.f32 0.01, %v585_v40  ;;  %vm699_vm5 = vcmp.ge.f32.partialorder %v585_v40, 0.0  ;;  %v765_v60 = vsel %vm701_vm6, %v593_v39, %v733_v51 }
 0x1e9   :  { %v587_v46 = vpop.f32.mrf.mxu1  ;;  %1419 = vmatprep.mubr.bf16.mxu0 %v791_v43 }
 0x1ea   :  { %vm702_vm4 = vcmp.ge.f32.partialorder %v596_v45, 0.0  ;;  %v734_v48 = vmul.f32 0.01, %v596_v45  ;;  %v588_v49 = vadd.f32 %v1724_v2, %v587_v46  ;;  %1420 = vmatmul.mubr.bf16.vlgmr.msra.gmra.mxu0 %v792_v44  ;;  %v763_v56 = vsel %vm699_vm5, %v585_v40, %v731_v47 }
 0x1eb   :  { %v1381_v52 = vpop.f32.mrf.mxu1 }
 0x1ec   :  { %vm700_vm7 = vcmp.ge.f32.partialorder %v588_v49, 0.0  ;;  %v732_v53 = vmul.f32 0.01, %v588_v49  ;;  %v766_v55 = vsel %vm702_vm4, %v596_v45, %v734_v48  ;;  %v609_v57 = vadd.f32 %v1381_v52, %v1724_v2 }
 0x1ed   :  { %v600_v54 = vpop.f32.mrf.mxu1  ;;  %v794_v62 = vpack.c.bf16 %v766_v55, %v765_v60 }
 0x1ee   :  { %v601_v19 = vadd.f32 %v1724_v2, %v600_v54  ;;  %v764_v32 = vsel %vm700_vm7, %v588_v49, %v732_v53  ;;  %v737_v5 = vmul.f32 0.01, %v609_v57  ;;  %vm705_vm10 = vcmp.ge.f32.partialorder %v609_v57, 0.0 }
 0x1ef   :  { %v1382_v58 = vpop.f32.mrf.mxu1  ;;  %v793_v59 = vpack.c.bf16 %v764_v32, %v763_v56 }
 0x1f0   :  { %v612_v61 = vadd.f32 %v1382_v58, %v1724_v2  ;;  %v735_v0 = vmul.f32 0.01, %v601_v19  ;;  %vm703_vm9 = vcmp.ge.f32.partialorder %v601_v19, 0.0  ;;  %v769_v17 = vsel %vm705_vm10, %v609_v57, %v737_v5 }
 0x1f1   :  { %v603_v63 = vpop.f32.mrf.mxu1  ;;  %1423 = vmatprep.mubr.bf16.mxu0 %v793_v59 }
 0x1f2   :  { %vm706_vm8 = vcmp.ge.f32.partialorder %v612_v61, 0.0  ;;  %v738_v1 = vmul.f32 0.01, %v612_v61  ;;  %v604_v4 = vadd.f32 %v1724_v2, %v603_v63  ;;  %1424 = vmatmul.mubr.bf16.gmra.mxu0 %v794_v62  ;;  %v767_v12 = vsel %vm703_vm9, %v601_v19, %v735_v0 }
 0x1f3   :  { %v1385_v7 = vpop.f32.mrf.mxu1 }
 0x1f4   :  { %vm704_vm11 = vcmp.ge.f32.partialorder %v604_v4, 0.0  ;;  %v736_v8 = vmul.f32 0.01, %v604_v4  ;;  %v770_v50 = vsel %vm706_vm8, %v612_v61, %v738_v1  ;;  %v625_v14 = vadd.f32 %v1385_v7, %v1724_v2 }
 0x1f5   :  { %v616_v9 = vpop.f32.mrf.mxu1  ;;  %v796_v18 = vpack.c.bf16 %v770_v50, %v769_v17 }
 0x1f6   :  { %v617_v11 = vadd.f32 %v1724_v2, %v616_v9  ;;  %v768_v13 = vsel %vm704_vm11, %v604_v4, %v736_v8  ;;  %v741_v24 = vmul.f32 0.01, %v625_v14  ;;  %vm709_vm14 = vcmp.ge.f32.partialorder %v625_v14, 0.0 }
 0x1f7   :  { %v1386_v6 = vpop.f32.mrf.mxu1  ;;  %v795_v16 = vpack.c.bf16 %v768_v13, %v767_v12 }
 0x1f8   :  { %v628_v15 = vadd.f32 %v1386_v6, %v1724_v2  ;;  %v739_v21 = vmul.f32 0.01, %v617_v11  ;;  %vm707_vm13 = vcmp.ge.f32.partialorder %v617_v11, 0.0  ;;  %v773_v3 = vsel %vm709_vm14, %v625_v14, %v741_v24 }
 0x1f9   :  { %v619_v20 = vpop.f32.mrf.mxu1  ;;  %1427 = vmatprep.mubr.bf16.mxu0 %v795_v16 }
 0x1fa   :  { %vm710_vm12 = vcmp.ge.f32.partialorder %v628_v15, 0.0  ;;  %v742_v22 = vmul.f32 0.01, %v628_v15  ;;  %v620_v23 = vadd.f32 %v1724_v2, %v619_v20  ;;  %1428 = vmatmul.mubr.bf16.gmra.mxu0 %v796_v18  ;;  %v771_v31 = vsel %vm707_vm13, %v617_v11, %v739_v21 }
 0x1fb   :  { %v1389_v26 = vpop.f32.mrf.mxu1 }
 0x1fc   :  { %vm708_vm15 = vcmp.ge.f32.partialorder %v620_v23, 0.0  ;;  %v740_v27 = vmul.f32 0.01, %v620_v23  ;;  %v774_v29 = vsel %vm710_vm12, %v628_v15, %v742_v22  ;;  %v641_v34 = vadd.f32 %v1389_v26, %v1724_v2 }
 0x1fd   :  { %v632_v28 = vpop.f32.mrf.mxu1  ;;  %v798_v38 = vpack.c.bf16 %v774_v29, %v773_v3 }
 0x1fe   :  { %v633_v30 = vadd.f32 %v1724_v2, %v632_v28  ;;  %v772_v33 = vsel %vm708_vm15, %v620_v23, %v740_v27  ;;  %v745_v39 = vmul.f32 0.01, %v641_v34  ;;  %vm713_vm2 = vcmp.ge.f32.partialorder %v641_v34, 0.0 }
 0x1ff   :  { %v1390_v35 = vpop.f32.mrf.mxu1  ;;  %v797_v36 = vpack.c.bf16 %v772_v33, %v771_v31 }
 0x200   :  { %v644_v37 = vadd.f32 %v1390_v35, %v1724_v2  ;;  %v743_v10 = vmul.f32 0.01, %v633_v30  ;;  %vm711_vm1 = vcmp.ge.f32.partialorder %v633_v30, 0.0  ;;  %v777_v53 = vsel %vm713_vm2, %v641_v34, %v745_v39 }
 0x201   :  { %v635_v40 = vpop.f32.mrf.mxu1  ;;  %1431 = vmatprep.mubr.bf16.mxu0 %v797_v36 }
 0x202   :  { %vm714_vm0 = vcmp.ge.f32.partialorder %v644_v37, 0.0  ;;  %v746_v25 = vmul.f32 0.01, %v644_v37  ;;  %v636_v41 = vadd.f32 %v1724_v2, %v635_v40  ;;  %1432 = vmatmul.mubr.bf16.gmra.mxu0 %v798_v38  ;;  %v775_v47 = vsel %vm711_vm1, %v633_v30, %v743_v10 }
 0x203   :  { %v1393_v42 = vpop.f32.mrf.mxu1 }
 0x204   :  { %vm712_vm3 = vcmp.ge.f32.partialorder %v636_v41, 0.0  ;;  %v744_v43 = vmul.f32 0.01, %v636_v41  ;;  %v778_v45 = vsel %vm714_vm0, %v644_v37, %v746_v25  ;;  %v657_v49 = vadd.f32 %v1393_v42, %v1724_v2 }
 0x205   :  { %v648_v44 = vpop.f32.mrf.mxu1  ;;  %v800_v55 = vpack.c.bf16 %v778_v45, %v777_v53 }
 0x206   :  { %v649_v46 = vadd.f32 %v1724_v2, %v648_v44  ;;  %v776_v48 = vsel %vm712_vm3, %v636_v41, %v744_v43  ;;  %v749_v58 = vmul.f32 0.01, %v657_v49  ;;  %vm717_vm6 = vcmp.ge.f32.partialorder %v657_v49, 0.0  ;;  %v1761_v41 = vld [vmem:[%s1884_s5] sm:$0xf]  ;;  %s1597_s5 = smov [#allocation9]  }
 0x207   :  { %v1394_v51 = vpop.f32.mrf.mxu1  ;;  %v799_v52 = vpack.c.bf16 %v776_v48, %v775_v47  ;;  %1305 = vmatprep.mubr.bf16.mxu1 %v1761_v41  ;;  %v1134_v47 = vld [vmem:[#allocation2] sm:$0x1]  ;;  %s1187_s22 = sshll.u32 %s1597_s5, 4  ;;  %s1188_s22 = int_to_ptr.vmem [resolvable:$true] %s1187_s22 }
 0x208   :  { %v660_v54 = vadd.f32 %v1394_v51, %v1724_v2  ;;  %v747_v56 = vmul.f32 0.01, %v649_v46  ;;  %vm715_vm5 = vcmp.ge.f32.partialorder %v649_v46, 0.0  ;;  %v781_v8 = vsel %vm717_vm6, %v657_v49, %v749_v58  ;;  %s1562_s23 = scalar_lea.vmem %s1188_s22, 32  ;;  %p1567_p2 = scmp.lt.s32.totalorder %s1188_s22, %s1188_s22 }
 0x209   :  { %v651_v19 = vpop.f32.mrf.mxu1  ;;  %1435 = vmatprep.mubr.bf16.mxu0 %v799_v52  ;;  %v1595_v49 = vmov 0   ;;  %p1563_p1 = scmp.ne.s32.totalorder %s1188_s22, %s1562_s23  ;;  %p1568_p3 = scmp.lt.s32.totalorder %s1562_s23, %s1562_s23 }
 0x20a   :  { %vm718_vm4 = vcmp.ge.f32.partialorder %v660_v54, 0.0  ;;  %v750_v32 = vmul.f32 0.01, %v660_v54  ;;  %v652_v57 = vadd.f32 %v1724_v2, %v651_v19  ;;  %1436 = vmatmul.mubr.bf16.gmra.mxu0 %v800_v55  ;;  %v779_v0 = vsel %vm715_vm5, %v649_v46, %v747_v56  ;;  %1477 = vset.pattern.permute.xlu0 %v1595_v49 }
 0x20b   :  { %v1397_v59 = vpop.f32.mrf.mxu1  ;;  %1137 = vperm.xlu0 %1477, %v1134_v47   ;;  %p1569_p4 = por %p1568_p3, %p1567_p2 }
 0x20c   :  { %vm716_vm7 = vcmp.ge.f32.partialorder %v652_v57, 0.0  ;;  %v748_v60 = vmul.f32 0.01, %v652_v57  ;;  %v782_v62 = vsel %vm718_vm4, %v660_v54, %v750_v32  ;;  %v673_v4 = vadd.f32 %v1397_v59, %v1724_v2 }
 0x20d   :  { %v664_v61 = vpop.f32.mrf.mxu1  ;;  %v802_v50 = vpack.c.bf16 %v782_v62, %v781_v8  ;;  %p1570_p5 = pnand %p1569_p4, %p1563_p1 }
 0x20e   :  { %v665_v63 = vadd.f32 %v1724_v2, %v664_v61  ;;  %v780_v1 = vsel %vm716_vm7, %v652_v57, %v748_v60  ;;  %v753_v6 = vmul.f32 0.01, %v673_v4  ;;  %vm721_vm10 = vcmp.ge.f32.partialorder %v673_v4, 0.0 }
 0x20f   :  { %v1398_v5 = vpop.f32.mrf.mxu1  ;;  %v801_v7 = vpack.c.bf16 %v780_v1, %v779_v0 }
 0x210   :  { %v676_v9 = vadd.f32 %v1398_v5, %v1724_v2  ;;  %v751_v12 = vmul.f32 0.01, %v665_v63  ;;  %vm719_vm9 = vcmp.ge.f32.partialorder %v665_v63, 0.0  ;;  %v785_v27 = vsel %vm721_vm10, %v673_v4, %v753_v6 }
 0x211   :  { %v667_v11 = vpop.f32.mrf.mxu1  ;;  %1439 = vmatprep.mubr.bf16.mxu0 %v801_v7 }
 0x212   :  { %vm722_vm8 = vcmp.ge.f32.partialorder %v676_v9, 0.0  ;;  %v754_v13 = vmul.f32 0.01, %v676_v9  ;;  %v668_v14 = vadd.f32 %v1724_v2, %v667_v11  ;;  %1440 = vmatmul.mubr.bf16.gmra.mxu0 %v802_v50  ;;  %v783_v21 = vsel %vm719_vm9, %v665_v63, %v751_v12 }
 0x213   :  { %v1401_v16 = vpop.f32.mrf.mxu1 }
 0x214   :  { %vm720_vm11 = vcmp.ge.f32.partialorder %v668_v14, 0.0  ;;  %v752_v17 = vmul.f32 0.01, %v668_v14  ;;  %v786_v18 = vsel %vm722_vm8, %v676_v9, %v754_v13  ;;  %v689_v23 = vadd.f32 %v1401_v16, %v1724_v2 }
 0x215   :  { %v680_v15 = vpop.f32.mrf.mxu1  ;;  %v804_v29 = vpack.c.bf16 %v786_v18, %v785_v27 }
 0x216   :  { %v681_v20 = vadd.f32 %v1724_v2, %v680_v15  ;;  %v784_v22 = vsel %vm720_vm11, %v668_v14, %v752_v17  ;;  %v757_v35 = vmul.f32 0.01, %v689_v23  ;;  %vm725_vm14 = vcmp.ge.f32.partialorder %v689_v23, 0.0 }
 0x217   :  { %v1402_v24 = vpop.f32.mrf.mxu1  ;;  %v803_v26 = vpack.c.bf16 %v784_v22, %v783_v21 }
 0x218   :  { %v692_v28 = vadd.f32 %v1402_v24, %v1724_v2  ;;  %v755_v31 = vmul.f32 0.01, %v681_v20  ;;  %vm723_vm13 = vcmp.ge.f32.partialorder %v681_v20, 0.0  ;;  %v789_v10 = vsel %vm725_vm14, %v689_v23, %v757_v35 }
 0x219   :  { %v683_v30 = vpop.f32.mrf.mxu1  ;;  %1443 = vmatprep.mubr.bf16.mxu0 %v803_v26 }
 0x21a   :  { %vm726_vm12 = vcmp.ge.f32.partialorder %v692_v28, 0.0  ;;  %v758_v33 = vmul.f32 0.01, %v692_v28  ;;  %v684_v34 = vadd.f32 %v1724_v2, %v683_v30  ;;  %1444 = vmatmul.mubr.bf16.gmra.mxu0 %v804_v29  ;;  %v787_v37 = vsel %vm723_vm13, %v681_v20, %v755_v31 }
 0x21c   :  { %vm724_vm15 = vcmp.ge.f32.partialorder %v684_v34, 0.0  ;;  %v756_v36 = vmul.f32 0.01, %v684_v34  ;;  %v790_v3 = vsel %vm726_vm12, %v692_v28, %v758_v33 }
 0x21d   :  { %v806_v25 = vpack.c.bf16 %v790_v3, %v789_v10 }
 0x21e   :  { %v788_v38 = vsel %vm724_vm15, %v684_v34, %v756_v36 }
 0x21f   :  { %v805_v40 = vpack.c.bf16 %v788_v38, %v787_v37 }
 0x221   :  { %1447 = vmatprep.mubr.bf16.mxu0 %v805_v40 }
 0x222   :  { %1448 = vmatmul.mubr.bf16.gmra.mxu0 %v806_v25 }
 0x2aa   :  { %v1421_v39 = vpop.f32.mrf.mxu0 }
 0x2ab   :  { %v850_v42 = vadd.f32 %v1421_v39, %v1724_v2 }
 0x2ac   :  { %v841_v43 = vpop.f32.mrf.mxu0 }
 0x2ad   :  { %v842_v44 = vadd.f32 %v1724_v2, %v841_v43  ;;  %v1002_v45 = vmul.f32 0.01, %v850_v42  ;;  %vm970_vm0 = vcmp.ge.f32.partialorder %v850_v42, 0.0 }
 0x2ae   :  { %v1422_v46 = vpop.f32.mrf.mxu0 }
 0x2af   :  { %v853_v48 = vadd.f32 %v1422_v46, %v1724_v2  ;;  %v1000_v52 = vmul.f32 0.01, %v842_v44  ;;  %v1768_v55 = vsel %vm970_vm0, %v850_v42, %v1002_v45  ;;  %vm968_vm2 = vcmp.ge.f32.partialorder %v842_v44, 0.0 }
 0x2b0   :  { %v844_v51 = vpop.f32.mrf.mxu0 }
 0x2b1   :  { %vm971_vm1 = vcmp.ge.f32.partialorder %v853_v48, 0.0  ;;  %v1003_v53 = vmul.f32 0.01, %v853_v48  ;;  %v845_v54 = vadd.f32 %v1724_v2, %v844_v51  ;;  %v1775_v60 = vsel %vm968_vm2, %v842_v44, %v1000_v52 }
 0x2b2   :  { %v1425_v19 = vpop.f32.mrf.mxu0 }
 0x2b3   :  { %v1770_v56 = vsel %vm971_vm1, %v853_v48, %v1003_v53  ;;  %vm969_vm3 = vcmp.ge.f32.partialorder %v845_v54, 0.0  ;;  %v1001_v32 = vmul.f32 0.01, %v845_v54  ;;  %v866_v57 = vadd.f32 %v1425_v19, %v1724_v2 }
 0x2b4   :  { %v1066_v58 = vpack.c.bf16 %v1770_v56, %v1768_v55  ;;  %v857_v59 = vpop.f32.mrf.mxu0 }
 0x2b5   :  { %v1777_v61 = vsel %vm969_vm3, %v845_v54, %v1001_v32  ;;  %v858_v62 = vadd.f32 %v1724_v2, %v857_v59  ;;  %v1006_v1 = vmul.f32 0.01, %v866_v57  ;;  %vm974_vm4 = vcmp.ge.f32.partialorder %v866_v57, 0.0 }
 0x2b6   :  { %v1065_v63 = vpack.c.bf16 %v1777_v61, %v1775_v60  ;;  %v1426_v0 = vpop.f32.mrf.mxu0 }
 0x2b7   :  { %v869_v4 = vadd.f32 %v1426_v0, %v1724_v2  ;;  %v1004_v7 = vmul.f32 0.01, %v858_v62  ;;  %vm972_vm6 = vcmp.ge.f32.partialorder %v858_v62, 0.0  ;;  %v1786_v11 = vsel %vm974_vm4, %v866_v57, %v1006_v1 }
 0x2b8   :  { %v860_v5 = vpop.f32.mrf.mxu0 }
 0x2b9   :  { %vm975_vm5 = vcmp.ge.f32.partialorder %v869_v4, 0.0  ;;  %v1007_v8 = vmul.f32 0.01, %v869_v4  ;;  %v861_v9 = vadd.f32 %v1724_v2, %v860_v5  ;;  %v1794_v16 = vsel %vm972_vm6, %v858_v62, %v1004_v7 }
 0x2ba   :  { %v1784_v50 = vpop.f32.mrf.mxu0 }
 0x2bb   :  { %v1788_v12 = vsel %vm975_vm5, %v869_v4, %v1007_v8  ;;  %vm973_vm7 = vcmp.ge.f32.partialorder %v861_v9, 0.0  ;;  %v1005_v13 = vmul.f32 0.01, %v861_v9 }
 0x2bc   :  { %v1068_v14 = vpack.c.bf16 %v1788_v12, %v1786_v11  ;;  %v1792_v6 = vpop.f32.mrf.mxu0 }
 0x2bd   :  { %v1796_v17 = vsel %vm973_vm7, %v861_v9, %v1005_v13 }
 0x2be   :  { %v1067_v15 = vpack.c.bf16 %v1796_v17, %v1794_v16  ;;  %v1800_v18 = vpop.f32.mrf.mxu0 }
 0x2c0   :  { %v1802_v20 = vpop.f32.mrf.mxu0 }
 0x2c2   :  { %v1433_v21 = vpop.f32.mrf.mxu0 }
 0x2c3   :  { %v898_v19 = vadd.f32 %v1433_v21, %v1724_v2 }
 0x2c4   :  { %v889_v22 = vpop.f32.mrf.mxu0 }
 0x2c5   :  { %vm982_vm13 = vcmp.ge.f32.partialorder %v898_v19, 0.0  ;;  %v1014_v4 = vmul.f32 0.01, %v898_v19 }
 0x2c6   :  { %v1434_v23 = vpop.f32.mrf.mxu0 }
 0x2c7   :  { %v901_v52 = vadd.f32 %v1434_v23, %v1724_v2 }
 0x2c8   :  { %v892_v24 = vpop.f32.mrf.mxu0 }
 0x2c9   :  { %v1015_v59 = vmul.f32 0.01, %v901_v52  ;;  %vm983_vm12 = vcmp.ge.f32.partialorder %v901_v52, 0.0  ;;  %v893_v21 = vadd.f32 %v1724_v2, %v892_v24 }
 0x2ca   :  { %v1437_v26 = vpop.f32.mrf.mxu0 }
 0x2cb   :  { %v914_v27 = vadd.f32 %v1437_v26, %v1724_v2  ;;  %v1047_v13 = vsel %vm983_vm12, %v901_v52, %v1015_v59  ;;  %vm981_vm2 = vcmp.ge.f32.partialorder %v893_v21, 0.0 }
 0x2cc   :  { %v905_v28 = vpop.f32.mrf.mxu0 }
 0x2cd   :  { %v906_v29 = vadd.f32 %v1724_v2, %v905_v28  ;;  %v1018_v31 = vmul.f32 0.01, %v914_v27  ;;  %vm986_vm8 = vcmp.ge.f32.partialorder %v914_v27, 0.0 }
 0x2ce   :  { %v1438_v30 = vpop.f32.mrf.mxu0 }
 0x2cf   :  { %v917_v33 = vadd.f32 %v1438_v30, %v1724_v2  ;;  %v1016_v35 = vmul.f32 0.01, %v906_v29  ;;  %vm984_vm10 = vcmp.ge.f32.partialorder %v906_v29, 0.0  ;;  %v1810_v40 = vsel %vm986_vm8, %v914_v27, %v1018_v31 }
 0x2d0   :  { %v908_v34 = vpop.f32.mrf.mxu0  ;;  %v890_v30 = vadd.f32 %v1724_v2, %v889_v22  ;;  %v885_v22 = vadd.f32 %v1800_v18, %v1724_v2 }
 0x2d1   :  { %vm987_vm9 = vcmp.ge.f32.partialorder %v917_v33, 0.0  ;;  %v1019_v36 = vmul.f32 0.01, %v917_v33  ;;  %v909_v3 = vadd.f32 %v1724_v2, %v908_v34  ;;  %v1818_v42 = vsel %vm984_vm10, %v906_v29, %v1016_v35 }
 0x2d2   :  { %v1808_v37 = vpop.f32.mrf.mxu0  ;;  %v1046_v29 = vsel %vm982_vm13, %v898_v19, %v1014_v4  ;;  %vm980_vm4 = vcmp.ge.f32.partialorder %v890_v30, 0.0  ;;  %v882_v19 = vadd.f32 %v1784_v50, %v1724_v2  ;;  %vm979_vm6 = vcmp.ge.f32.partialorder %v885_v22, 0.0 }
 0x2d3   :  { %vm985_vm11 = vcmp.ge.f32.partialorder %v909_v3, 0.0  ;;  %v1017_v38 = vmul.f32 0.01, %v909_v3  ;;  %v1812_v10 = vsel %vm987_vm9, %v917_v33, %v1019_v36  ;;  %v1072_v33 = vpack.c.bf16 %v1047_v13, %v1046_v29 }
 0x2d4   :  { %v1814_v25 = vpop.f32.mrf.mxu0  ;;  %v1074_v39 = vpack.c.bf16 %v1812_v10, %v1810_v40  ;;  %vm978_vm8 = vcmp.ge.f32.partialorder %v882_v19, 0.0 }
 0x2d5   :  { %v1820_v43 = vsel %vm985_vm11, %v909_v3, %v1017_v38  ;;  %v1013_v3 = vmul.f32 0.01, %v893_v21 }
 0x2d6   :  { %v1822_v44 = vpop.f32.mrf.mxu0  ;;  %v1073_v45 = vpack.c.bf16 %v1820_v43, %v1818_v42 }
 0x2d7   :  { %v933_v50 = vadd.f32 %v1822_v44, %v1724_v2 }
 0x2d8   :  { %v1826_v46 = vpop.f32.mrf.mxu0 }
 0x2d9   :  { %vm991_vm11 = vcmp.ge.f32.partialorder %v933_v50, 0.0 }
 0x2da   :  { %v1445_v47 = vpop.f32.mrf.mxu0 }
 0x2db   :  { %v946_v34 = vadd.f32 %v1445_v47, %v1724_v2 }
 0x2dc   :  { %v937_v48 = vpop.f32.mrf.mxu0 }
 0x2dd   :  { %v1026_v52 = vmul.f32 0.01, %v946_v34  ;;  %vm994_vm5 = vcmp.ge.f32.partialorder %v946_v34, 0.0  ;;  %v938_v59 = vadd.f32 %v1724_v2, %v937_v48 }
 0x2de   :  { %v1446_v49 = vpop.f32.mrf.mxu0 }
 0x2df   :  { %v949_v23 = vadd.f32 %v1446_v49, %v1724_v2  ;;  %v1012_v49 = vmul.f32 0.01, %v890_v30  ;;  %v1024_v18 = vmul.f32 0.01, %v938_v59  ;;  %vm992_vm9 = vcmp.ge.f32.partialorder %v938_v59, 0.0 }
 0x2e0   :  { %v940_v51 = vpop.f32.mrf.mxu0 }
 0x2e1   :  { %v1027_v38 = vmul.f32 0.01, %v949_v23  ;;  %vm995_vm3 = vcmp.ge.f32.partialorder %v949_v23, 0.0  ;;  %v941_v47 = vadd.f32 %v1724_v2, %v940_v51 }
 0x2e2   :  { %v1449_v53 = vpop.f32.mrf.mxu0 }
 0x2e3   :  { %v962_v54 = vadd.f32 %v1449_v53, %v1724_v2  ;;  %v1045_v53 = vsel %vm981_vm2, %v893_v21, %v1013_v3  ;;  %v1025_v4 = vmul.f32 0.01, %v941_v47  ;;  %vm993_vm7 = vcmp.ge.f32.partialorder %v941_v47, 0.0 }
 0x2e4   :  { %v953_v32 = vpop.f32.mrf.mxu0  ;;  %v930_v21 = vadd.f32 %v1808_v37, %v1724_v2  ;;  %v922_v37 = vadd.f32 %v1724_v2, %v1814_v25  ;;  %v1138_v25 = vpop.permute.xlu0 %1137 }
 0x2e5   :  { %v954_v57 = vadd.f32 %v1724_v2, %v953_v32  ;;  %v1030_v0 = vmul.f32 0.01, %v962_v54  ;;  %vm998_vm14 = vcmp.ge.f32.partialorder %v962_v54, 0.0  ;;  %v1044_v32 = vsel %vm980_vm4, %v890_v30, %v1012_v49 }
 0x2e6   :  { %v1450_v62 = vpop.f32.mrf.mxu0  ;;  %v1057_v48 = vsel %vm993_vm7, %v941_v47, %v1025_v4  ;;  %v1022_v44 = vmul.f32 0.01, %v930_v21  ;;  %vm990_vm13 = vcmp.ge.f32.partialorder %v930_v21, 0.0  ;;  %v1020_v3 = vmul.f32 0.01, %v922_v37 }
 0x2e7   :  { %v965_v1 = vadd.f32 %v1450_v62, %v1724_v2  ;;  %v1028_v7 = vmul.f32 0.01, %v954_v57  ;;  %vm996_vm0 = vcmp.ge.f32.partialorder %v954_v57, 0.0  ;;  %v1062_v27 = vsel %vm998_vm14, %v962_v54, %v1030_v0 }
 0x2e8   :  { %v956_v5 = vpop.f32.mrf.mxu0  ;;  %v1059_v54 = vsel %vm995_vm3, %v949_v23, %v1027_v38  ;;  %v1058_v62 = vsel %vm994_vm5, %v946_v34, %v1026_v52  ;;  %v1011_v0 = vmul.f32 0.01, %v885_v22  ;;  %v1056_v23 = vsel %vm992_vm9, %v938_v59, %v1024_v18 }
 0x2e9   :  { %vm999_vm15 = vcmp.ge.f32.partialorder %v965_v1, 0.0  ;;  %v1031_v8 = vmul.f32 0.01, %v965_v1  ;;  %v957_v9 = vadd.f32 %v1724_v2, %v956_v5  ;;  %v1060_v35 = vsel %vm996_vm0, %v954_v57, %v1028_v7 }
 0x2ea   :  { %v1071_v57 = vpack.c.bf16 %v1045_v53, %v1044_v32  ;;  %v1010_v5 = vmul.f32 0.01, %v882_v19  ;;  %v1043_v51 = vsel %vm979_vm6, %v885_v22, %v1011_v0  ;;  %v877_v7 = vadd.f32 %v1724_v2, %v1802_v20 }
 0x2eb   :  { %vm997_vm1 = vcmp.ge.f32.partialorder %v957_v9, 0.0  ;;  %v1029_v26 = vmul.f32 0.01, %v957_v9  ;;  %v1063_v28 = vsel %vm999_vm15, %v965_v1, %v1031_v8  ;;  %v1078_v1 = vpack.c.bf16 %v1059_v54, %v1058_v62 }
 0x2ec   :  { %v1080_v31 = vpack.c.bf16 %v1063_v28, %v1062_v27  ;;  %v1042_v8 = vsel %vm978_vm8, %v882_v19, %v1010_v5  ;;  %v1077_v27 = vpack.c.bf16 %v1057_v48, %v1056_v23  ;;  %vm977_vm10 = vcmp.ge.f32.partialorder %v877_v7, 0.0 }
 0x2ed   :  { %v1061_v36 = vsel %vm997_vm1, %v957_v9, %v1029_v26  ;;  %v874_v9 = vadd.f32 %v1724_v2, %v1792_v6  ;;  %v1070_v13 = vpack.c.bf16 %v1043_v51, %v1042_v8  ;;  %v1009_v26 = vmul.f32 0.01, %v877_v7 }
 0x2ee   :  { %1289 = vmatprep.subr.bf16.mxu1 %v1080_v31  ;;  %v1079_v24 = vpack.c.bf16 %v1061_v36, %v1060_v35  ;;  %v1023_v28 = vmul.f32 0.01, %v933_v50  ;;  %v925_v6 = vadd.f32 %v1724_v2, %v1826_v46  ;;  %v1054_v34 = vsel %vm990_vm13, %v930_v21, %v1022_v44 }
 0x2ef   :  { %1290 = vmatpush3.bf16.xpose.msra.mxu1 %v1072_v33  ;;  %v1008_v20 = vmul.f32 0.01, %v874_v9  ;;  %vm976_vm12 = vcmp.ge.f32.partialorder %v874_v9, 0.0  ;;  %v1041_v29 = vsel %vm977_vm10, %v877_v7, %v1009_v26  ;;  %vm988_vm15 = vcmp.ge.f32.partialorder %v922_v37, 0.0 }
 0x2f0   :  { %1291 = vmatprep.subr.bf16.mxu1 %v1079_v24  ;;  %v1055_v30 = vsel %vm991_vm11, %v933_v50, %v1023_v28  ;;  %v1021_v36 = vmul.f32 0.01, %v925_v6  ;;  %vm989_vm14 = vcmp.ge.f32.partialorder %v925_v6, 0.0  ;;  %v1052_v38 = vsel %vm988_vm15, %v922_v37, %v1020_v3 }
 0x2f1   :  { %v1040_v31 = vsel %vm976_vm12, %v874_v9, %v1008_v20  ;;  %v1076_v35 = vpack.c.bf16 %v1055_v30, %v1054_v34  ;;  %v1140_v2 = vlaneseq }
 0x2f2   :  { %v1069_v33 = vpack.c.bf16 %v1041_v29, %v1040_v31  ;;  %v1053_v24 = vsel %vm989_vm14, %v925_v6, %v1021_v36 }
 0x2f3   :  { %v1075_v49 = vpack.c.bf16 %v1053_v24, %v1052_v38  ;;  %vm1178_vm0 = vcmp.lt.s32.totalorder %v1140_v2, 256 }
 0x2f7   :  { %1292 = vmatpush3.bf16.xpose.msra.mxu1 %v1071_v57  ;;  %v1596_v57 = vmov 1966171168  }
 0x2f8   :  { %1293 = vmatprep.subr.bf16.mxu1 %v1078_v1  ;;  %v1162_v59 = vunpack.c.l.s4 %v1596_v57 }
 0x2fa   :  { %v1163_v62 = vunpack.c.0.s8 %v1162_v59 }
 0x2ff   :  { %1294 = vmatpush3.bf16.xpose.msra.mxu1 %v1070_v13 }
 0x300   :  { %1295 = vmatprep.subr.bf16.mxu1 %v1077_v27 }
 0x307   :  { %1296 = vmatpush3.bf16.xpose.msra.mxu1 %v1069_v33 }
 0x308   :  { %1297 = vmatprep.subr.bf16.mxu1 %v1076_v35 }
 0x30f   :  { %1298 = vmatpush3.bf16.xpose.msra.mxu1 %v1068_v14  ;;  %v1141_v14 = vshrl.u32 %v1140_v2, 7 }
 0x310   :  { %1299 = vmatprep.subr.bf16.mxu1 %v1075_v49 }
 0x311   :  { %v1166_v1 = vsub.s32 %v1163_v62, %v1141_v14 }
 0x317   :  { %1300 = vmatpush3.bf16.xpose.msra.mxu1 %v1067_v15 }
 0x318   :  { %1301 = vmatprep.subr.bf16.mxu1 %v1074_v39 }
 0x31f   :  { %1302 = vmatpush3.bf16.xpose.msra.mxu1 %v1066_v58  ;;  %v1142_v58 = vsub.s32 0, %v1141_v14 }
 0x320   :  { %1303 = vmatprep.subr.bf16.mxu1 %v1073_v45 }
 0x321   :  { %v1143_v61 = vrot.slane %v1138_v25, %v1142_v58 }
 0x327   :  { %1304 = vmatpush3.bf16.xpose.msra.mxu1 %v1065_v63 }
 0x32e   :  { %1306 = vmatmul.mubr.bf16.vlgmr.msra.gmra.mxu1 %v1761_v41 }
 0x3ee   :  { %v1115_v11 = vpop.f32.mrf.mxu1 }
 0x3ef   :  { %v1122_v12 = vrot.slane %v1115_v11, 4 }
 0x3f0   :  { %v1117_v16 = vpop.f32.mrf.mxu1 }
 0x3f1   :  { %v1123_v17 = vadd.f32 %v1122_v12, %v1115_v11  ;;  %v1128_v15 = vrot.slane %v1117_v16, 4 }
 0x3f2   :  { %v1119_v40 = vpop.f32.mrf.mxu1 }
 0x3f3   :  { %v1124_v55 = vrot.slane %v1123_v17, 2  ;;  %v1129_v56 = vadd.f32 %v1128_v15, %v1117_v16 }
 0x3f4   :  { %v1120_v10 = vpop.f32.mrf.mxu1 }
 0x3f5   :  { %v1125_v39 = vadd.f32 %v1124_v55, %v1123_v17  ;;  %v1130_v42 = vrot.slane %v1129_v56, 2 }
 0x3f7   :  { %v1126_v43 = vrot.slane %v1125_v39, 1  ;;  %v1131_v60 = vadd.f32 %v1130_v42, %v1129_v56 }
 0x3f9   :  { %v1132_v63 = vrot.slane %v1131_v60, 1  ;;  %v1127_v41 = vadd.f32 %v1126_v43, %v1125_v39 }
 0x3fb   :  { %v1133_v45 = vadd.f32 %v1132_v63, %v1131_v60  ;;  %v1144_v46 = vadd.f32 %v1143_v61, %v1127_v41 }
 0x3fd   :  { %v1145_v52 = vadd.f32 %v1143_v61, %v1133_v45  ;;  %v1215_v22 = vmul.f32 -1.442695, %v1144_v46 }
 0x3ff   :  { %1494 = vpow2.f32 %v1215_v22  ;;  %v1216_v53 = vmul.f32 -1.442695, %v1145_v52 }
 0x401   :  { %1496 = vpow2.f32 %v1216_v53 }
 0x40c   :  { %v1495_v47 = vpop.eup %1494 }
 0x40d   :  { %v1152_v54 = vadd.f32 1.0, %v1495_v47 }
 0x40e   :  { %v1497_v19 = vpop.eup %1496 }
 0x40f   :  { %v1153_v32 = vadd.f32 1.0, %v1497_v19  ;;  %1498 = vrcp.f32 %v1152_v54 }
 0x411   :  { %1500 = vrcp.f32 %v1153_v32 }
 0x41c   :  { %v1499_v0 = vpop.eup %1498 }
 0x41e   :  { %v1501_v4 = vpop.eup %1500 }
 0x41f   :  { %v1160_v5 = vcombine.low %v1499_v0, %v1501_v4 }
 0x421   :  { %v1167_v18 = vrot.slane %v1160_v5, %v1166_v1 }
 0x423   :  { %v1174_v51 = vrot.slane %v1167_v18, %v1166_v1 }
 0x425   :  { %1180 = vst.msk [vmem:[#allocation9] sm:$0x3] %vm1178_vm0, %v1174_v51 }
 0x426   :  { %1573 = shalt.err (!%p1570_p5)
}
 0x427   :  { %1190 = dma.vmem_to_hbm [thread:$0]  %s1188_s22, 32, %s1886_s7, [#allocation5]  }
 0x428   :  { %1586 = dma.done.wait [#allocation5], 32  }
 0x429   :  { %1587 = vsyncadd [#allocation5], 4294967264 }
 0x42a   :  { %1194 = vsyncpa [#allocation4], 1 }
 0x42b   :  { %1195 = vsyncpa [#allocation7], 1 }
 0x42c   :  { %1196 = vsyncpa [#allocation5], 1 }

</bundles_post_ra>
